<compile_context>
chip_gen: v7x
topology: tpu7x:2x2x1
jax: 0.10.0
libtpu: 0.0.40
codegen_flags: <defaults>
</compile_context>

<pallas_src>
import functools

import jax
import jax.numpy as jnp
from jax.experimental import pallas as pl
from jax.experimental.pallas import tpu as pltpu

EPS_COS = 1e-8  # eps used by nn.CosineEmbeddingLoss' cosine_similarity


def _cos_rows(a, b):
    """Per-row cosine similarity, (N, H) x (N, H) -> (N, 1).

    Squared norms + rsqrt put the divide/sqrt on the EUP (its own VLIW slot);
    equivalent to dot / max(||a||*||b||, eps) since both factors are >= 0.
    """
    dot = jnp.sum(a * b, axis=-1, keepdims=True)
    na2 = jnp.sum(a * a, axis=-1, keepdims=True)
    nb2 = jnp.sum(b * b, axis=-1, keepdims=True)
    return dot * jax.lax.rsqrt(jnp.maximum(na2 * nb2, EPS_COS * EPS_COS))


def meat_loss_kernel(w_ref,                   # SMEM (4,)            loss weights
                     src_ref, tgt_ref,        # VMEM (TB, H)         sentence-embed tiles
                     wml_ref, bml_ref,        # VMEM (H, 2H), (1,2H) fused [wm|wl], [bm|bl]
                     wd_ref, bd_ref,          # VMEM (H, L), (1, L)  discriminator
                     out_ref,                 # SMEM (5,)  [total, rec, crec, lang, adv]
                     acc_ref,                 # SMEM (4,)  running sums over batch tiles
                     *, tile_b, hidden, batch):
    i = pl.program_id(0)

    @pl.when(i == 0)
    def _init():
        acc_ref[0] = jnp.float32(0.0)
        acc_ref[1] = jnp.float32(0.0)
        acc_ref[2] = jnp.float32(0.0)
        acc_ref[3] = jnp.float32(0.0)

    # Stack src|tgt along sublanes so each weight goes through the MXU once.
    x = jnp.concatenate([src_ref[...], tgt_ref[...]], axis=0)            # (2TB, H)

    # Fused pooler: [meaning | lang] = x @ [wm | wl] + [bm | bl]  (one MXU pass)
    ml = jnp.dot(x, wml_ref[...], preferred_element_type=jnp.float32) + bml_ref[...]
    m = ml[:, :hidden]                                                   # (2TB, H)
    l = ml[:, hidden:]                                                   # (2TB, H)

    # Discriminator logits for src and tgt halves in a single MXU pass.
    logits = jnp.dot(m, wd_ref[...], preferred_element_type=jnp.float32) + bd_ref[...]

    # CosineEmbeddingLoss(y=+1): rows of (1 - cos(m+l, x)); covers both halves.
    rec_rows = 1.0 - _cos_rows(m + l, x)                                 # (2TB, 1)

    # Cross reconstruction: swap the src/tgt halves of lang-embed and target.
    l_sw = jnp.concatenate([l[tile_b:], l[:tile_b]], axis=0)             # [l_tgt ; l_src]
    x_sw = jnp.concatenate([x[tile_b:], x[:tile_b]], axis=0)             # [tgt ; src]
    crec_rows = 1.0 - _cos_rows(m + l_sw, x_sw)                          # (2TB, 1)

    # CosineEmbeddingLoss(y=-1, margin=0): rows of max(cos(l_src, l_tgt), 0).
    lang_rows = jnp.maximum(_cos_rows(l[:tile_b], l[tile_b:]), 0.0)      # (TB, 1)

    # CrossEntropy vs uniform(1/L) target  ==  logsumexp - mean_c(logits), per row.
    mx = jnp.max(logits, axis=-1, keepdims=True)
    lse = mx + jnp.log(jnp.sum(jnp.exp(logits - mx), axis=-1, keepdims=True))
    adv_rows = lse - jnp.mean(logits, axis=-1, keepdims=True)            # (2TB, 1)

    acc_ref[0] += jnp.sum(rec_rows)
    acc_ref[1] += jnp.sum(crec_rows)
    acc_ref[2] += jnp.sum(lang_rows)
    acc_ref[3] += jnp.sum(adv_rows)

    @pl.when(i == pl.num_programs(0) - 1)
    def _finalize():
        inv_b = 1.0 / float(batch)        # each torch loss term is a mean over B rows
        rec = acc_ref[0] * inv_b
        crec = acc_ref[1] * inv_b
        lang = acc_ref[2] * inv_b
        adv = acc_ref[3] * inv_b
        total = (w_ref[0] * rec + w_ref[1] * crec +
                 w_ref[2] * lang + w_ref[3] * adv)
        out_ref[0] = total
        out_ref[1] = rec
        out_ref[2] = crec
        out_ref[3] = lang
        out_ref[4] = adv


def meat_base_loss(weights, src_sent, tgt_sent, wm, bm, wl, bl, wd, bd, *, tile_b=None):
    B, H = src_sent.shape
    L = wd.shape[-1]

    if tile_b is None:
        tile_b = B
        for cand in (512, 256, 128, 64, 32, 16, 8):   # biggest tile that divides B
            if B % cand == 0:
                tile_b = cand
                break
    assert B % tile_b == 0 and (tile_b % 8 == 0 or tile_b == B)
    grid = (B // tile_b,)

    # Host-side operand fusion: single pooler weight / bias [wm | wl], [bm | bl].
    wml = jnp.concatenate([wm, wl], axis=1).astype(jnp.float32)          # (H, 2H)
    bml = jnp.concatenate([bm, bl], axis=1).astype(jnp.float32)          # (1, 2H)

    kernel = functools.partial(meat_loss_kernel, tile_b=tile_b, hidden=H, batch=B)

    smem = pl.BlockSpec(memory_space=pltpu.MemorySpace.SMEM)
    flops = int(2 * (2 * B) * H * (2 * H + L))
    transcendentals = int((2 * B) * (L + 1) + 5 * B)
    bytes_accessed = int(4 * (weights.size + src_sent.size + tgt_sent.size +
                              wml.size + bml.size + wd.size + bd.size + 5))

    return pl.pallas_call(
        kernel,
        out_shape=jax.ShapeDtypeStruct((5,), jnp.float32),
        grid_spec=pltpu.PrefetchScalarGridSpec(
            num_scalar_prefetch=0,
            grid=grid,
            in_specs=[
                smem,                                                # loss weights (SMEM)
                pl.BlockSpec((tile_b, H), lambda i: (i, 0)),         # src tile
                pl.BlockSpec((tile_b, H), lambda i: (i, 0)),         # tgt tile
                pl.BlockSpec((H, 2 * H), lambda i: (0, 0)),          # [wm|wl] (VMEM resident)
                pl.BlockSpec((1, 2 * H), lambda i: (0, 0)),          # [bm|bl]
                pl.BlockSpec((H, L), lambda i: (0, 0)),              # wd
                pl.BlockSpec((1, L), lambda i: (0, 0)),              # bd
            ],
            out_specs=smem,
            scratch_shapes=[pltpu.SMEM((4,), jnp.float32)],
        ),
        compiler_params=pltpu.CompilerParams(
            dimension_semantics=("arbitrary",),     # batch axis carries SMEM accumulators
            vmem_limit_bytes=48 * 1024 * 1024,
        ),
        cost_estimate=pl.CostEstimate(
            flops=flops, transcendentals=transcendentals, bytes_accessed=bytes_accessed),
    )(weights.astype(jnp.float32),
      src_sent.astype(jnp.float32), tgt_sent.astype(jnp.float32),
      wml, bml, wd.astype(jnp.float32), bd.astype(jnp.float32))


# ---------------- synthetic "model" (plain-JAX glue) ----------------
def synthetic_sentence_embed(input_ids, emb_table, w_pool, b_pool):
    # stands in for `self.model(input_ids).pooler_output`
    tok = emb_table[input_ids]                 # (B, S, H)
    mean = jnp.mean(tok, axis=1)               # (B, H)
    return jnp.tanh(mean @ w_pool + b_pool)    # (B, H)


# ---------------- pure-JAX reference (independent math) ----------------
def _cos_rows_ref(a, b):
    dot = jnp.sum(a * b, axis=-1, keepdims=True)
    na = jnp.sqrt(jnp.sum(a * a, axis=-1, keepdims=True))
    nb = jnp.sqrt(jnp.sum(b * b, axis=-1, keepdims=True))
    return dot / jnp.maximum(na * nb, EPS_COS)


def _ce_uniform_ref(logits):
    m = jnp.max(logits, axis=-1, keepdims=True)
    lse = m + jnp.log(jnp.sum(jnp.exp(logits - m), axis=-1, keepdims=True))
    logsm = logits - lse
    n_cls = logits.shape[-1]
    return jnp.mean(-jnp.sum(logsm, axis=-1, keepdims=True) / n_cls)


def reference_loss(weights, src, tgt, wm, bm, wl, bl, wd, bd):
    m_src, l_src = src @ wm + bm, src @ wl + bl
    m_tgt, l_tgt = tgt @ wm + bm, tgt @ wl + bl
    lo_s, lo_t = m_src @ wd + bd, m_tgt @ wd + bd
    rec = (jnp.mean(1 - _cos_rows_ref(m_src + l_src, src)) +
           jnp.mean(1 - _cos_rows_ref(m_tgt + l_tgt, tgt)))
    crec = (jnp.mean(1 - _cos_rows_ref(m_src + l_tgt, tgt)) +
            jnp.mean(1 - _cos_rows_ref(m_tgt + l_src, src)))
    lang = jnp.mean(jnp.maximum(_cos_rows_ref(l_src, l_tgt), 0.0))
    adv = _ce_uniform_ref(lo_s) + _ce_uniform_ref(lo_t)
    total = weights[0]*rec + weights[1]*crec + weights[2]*lang + weights[3]*adv
    return jnp.stack([total, rec, crec, lang, adv])


if __name__ == "__main__":
    B, S, H, V, L = 16, 8, 32, 64, 4   # batch, seq, hidden, vocab, n_languages

    key = jax.random.PRNGKey(0)
    ks = jax.random.split(key, 10)

    # deterministic parameter init
    emb_table = 0.1 * jax.random.normal(ks[0], (V, H), jnp.float32)
    w_pool = 0.1 * jax.random.normal(ks[1], (H, H), jnp.float32)
    b_pool = jnp.zeros((H,), jnp.float32)
    wm = 0.1 * jax.random.normal(ks[2], (H, H), jnp.float32)
    bm = 0.01 * jax.random.normal(ks[3], (1, H), jnp.float32)
    wl = 0.1 * jax.random.normal(ks[4], (H, H), jnp.float32)
    bl = 0.01 * jax.random.normal(ks[5], (1, H), jnp.float32)
    wd = 0.1 * jax.random.normal(ks[6], (H, L), jnp.float32)
    bd = 0.01 * jax.random.normal(ks[7], (1, L), jnp.float32)

    src_ids = jax.random.randint(ks[8], (B, S), 0, V)
    tgt_ids = jax.random.randint(ks[9], (B, S), 0, V)
    # lang labels are accepted by BaseLoss.forward but unused in vanilla loss
    src_lang_label = jnp.zeros((B,), jnp.int32)
    tgt_lang_label = jnp.ones((B,), jnp.int32)

    loss_weights = jnp.array([1.0, 1.0, 1.0, 1.0], jnp.float32)

    src_sent = synthetic_sentence_embed(src_ids, emb_table, w_pool, b_pool)
    tgt_sent = synthetic_sentence_embed(tgt_ids, emb_table, w_pool, b_pool)

    # tile_b=8 with B=16 exercises the 2-step batch grid + SMEM accumulators.
    out = meat_base_loss(loss_weights, src_sent, tgt_sent,
                         wm, bm, wl, bl, wd, bd, tile_b=8)
    out = jax.block_until_ready(out)

    ref = reference_loss(loss_weights, src_sent, tgt_sent, wm, bm, wl, bl, wd, bd)
    ref = jax.block_until_ready(ref)

    assert jnp.all(jnp.isfinite(out)), "non-finite loss"
    assert jnp.allclose(out, ref, rtol=1e-3, atol=1e-3), (out, ref)

    print("KERNEL_OK")
</pallas_src>

<mosaic_0001>
module attributes {stable_mosaic.version = 11 : i64} {
  func.func @meat_loss_kernel(%arg0: i32, %arg1: memref<4xf32, #tpu.memory_space<smem>>, %arg2: memref<8x32xf32, #tpu.memory_space<vmem>>, %arg3: memref<8x32xf32, #tpu.memory_space<vmem>>, %arg4: memref<32x64xf32, #tpu.memory_space<vmem>>, %arg5: memref<1x64xf32, #tpu.memory_space<vmem>>, %arg6: memref<32x4xf32, #tpu.memory_space<vmem>>, %arg7: memref<1x4xf32, #tpu.memory_space<vmem>>, %arg8: memref<5xf32, #tpu.memory_space<smem>>, %arg9: memref<4xf32, #tpu.memory_space<smem>>) attributes {dimension_semantics = [#tpu.dimension_semantics<arbitrary>], iteration_bounds = array<i64: 2>, scalar_prefetch = 0 : i64, scratch_operands = 1 : i64, tpu.core_type = #tpu.core_type<tc>, window_params = [{transform_indices = @transform_0, window_bounds = array<i64: 4>}, {transform_indices = @transform_1, window_bounds = array<i64: 8, 32>}, {transform_indices = @transform_2, window_bounds = array<i64: 8, 32>}, {pipeline_mode = #tpu.pipeline_mode<synchronous>, transform_indices = @transform_3, window_bounds = array<i64: 32, 64>}, {pipeline_mode = #tpu.pipeline_mode<synchronous>, transform_indices = @transform_4, window_bounds = array<i64: 1, 64>}, {pipeline_mode = #tpu.pipeline_mode<synchronous>, transform_indices = @transform_5, window_bounds = array<i64: 32, 4>}, {pipeline_mode = #tpu.pipeline_mode<synchronous>, transform_indices = @transform_6, window_bounds = array<i64: 1, 4>}, {transform_indices = @transform_7, window_bounds = array<i64: 5>}]} {
    %c0_i32 = arith.constant 0 : i32
    %0 = arith.cmpi eq, %arg0, %c0_i32 : i32
    %1 = arith.extui %0 : i1 to i32
    %c0_i32_0 = arith.constant 0 : i32
    %2 = arith.cmpi ne, %1, %c0_i32_0 : i32
    scf.if %2 {
      %cst_42 = arith.constant 0.000000e+00 : f32
      %c0_43 = arith.constant 0 : index
      %121 = memref.load %arg9[%c0_43] : memref<4xf32, #tpu.memory_space<smem>>
      memref.store %cst_42, %arg9[%c0_43] : memref<4xf32, #tpu.memory_space<smem>>
      %cst_44 = arith.constant 0.000000e+00 : f32
      %c1_45 = arith.constant 1 : index
      %122 = memref.load %arg9[%c1_45] : memref<4xf32, #tpu.memory_space<smem>>
      memref.store %cst_44, %arg9[%c1_45] : memref<4xf32, #tpu.memory_space<smem>>
      %cst_46 = arith.constant 0.000000e+00 : f32
      %c2_47 = arith.constant 2 : index
      %123 = memref.load %arg9[%c2_47] : memref<4xf32, #tpu.memory_space<smem>>
      memref.store %cst_46, %arg9[%c2_47] : memref<4xf32, #tpu.memory_space<smem>>
      %cst_48 = arith.constant 0.000000e+00 : f32
      %c3_49 = arith.constant 3 : index
      %124 = memref.load %arg9[%c3_49] : memref<4xf32, #tpu.memory_space<smem>>
      memref.store %cst_48, %arg9[%c3_49] : memref<4xf32, #tpu.memory_space<smem>>
    } else {
    }
    %c0 = arith.constant 0 : index
    %c0_1 = arith.constant 0 : index
    %3 = vector.load %arg2[%c0, %c0_1] : memref<8x32xf32, #tpu.memory_space<vmem>>, vector<8x32xf32>
    %c0_2 = arith.constant 0 : index
    %c0_3 = arith.constant 0 : index
    %4 = vector.load %arg3[%c0_2, %c0_3] : memref<8x32xf32, #tpu.memory_space<vmem>>, vector<8x32xf32>
    %5 = tpu.concatenate %3, %4 in 0 : vector<8x32xf32>, vector<8x32xf32> -> vector<16x32xf32>
    %c0_4 = arith.constant 0 : index
    %c0_5 = arith.constant 0 : index
    %6 = vector.load %arg4[%c0_4, %c0_5] : memref<32x64xf32, #tpu.memory_space<vmem>>, vector<32x64xf32>
    %cst = arith.constant dense<0.000000e+00> : vector<16x64xf32>
    %7 = tpu.matmul %5, %6, %cst {dimension_numbers = #tpu.dot_dimension_numbers<[1], [0], [0], [1], [0, 0, 1, 1], [], []>} : vector<16x32xf32>, vector<32x64xf32>, vector<16x64xf32> -> vector<16x64xf32>
    %c0_6 = arith.constant 0 : index
    %c0_7 = arith.constant 0 : index
    %8 = vector.load %arg5[%c0_6, %c0_7] : memref<1x64xf32, #tpu.memory_space<vmem>>, vector<1x64xf32>
    %9 = vector.broadcast %8 : vector<1x64xf32> to vector<16x64xf32>
    %10 = arith.addf %7, %9 : vector<16x64xf32>
    %11 = vector.extract_strided_slice %10 {offsets = [0, 0], sizes = [16, 32], strides = [1, 1]} : vector<16x64xf32> to vector<16x32xf32>
    %12 = vector.extract_strided_slice %10 {offsets = [0, 32], sizes = [16, 32], strides = [1, 1]} : vector<16x64xf32> to vector<16x32xf32>
    %c0_8 = arith.constant 0 : index
    %c0_9 = arith.constant 0 : index
    %13 = vector.load %arg6[%c0_8, %c0_9] : memref<32x4xf32, #tpu.memory_space<vmem>>, vector<32x4xf32>
    %cst_10 = arith.constant dense<0.000000e+00> : vector<16x4xf32>
    %14 = tpu.matmul %11, %13, %cst_10 {dimension_numbers = #tpu.dot_dimension_numbers<[1], [0], [0], [1], [0, 0, 1, 1], [], []>} : vector<16x32xf32>, vector<32x4xf32>, vector<16x4xf32> -> vector<16x4xf32>
    %c0_11 = arith.constant 0 : index
    %c0_12 = arith.constant 0 : index
    %15 = vector.load %arg7[%c0_11, %c0_12] : memref<1x4xf32, #tpu.memory_space<vmem>>, vector<1x4xf32>
    %16 = vector.broadcast %15 : vector<1x4xf32> to vector<16x4xf32>
    %17 = arith.addf %14, %16 : vector<16x4xf32>
    %18 = arith.addf %11, %12 : vector<16x32xf32>
    %19 = arith.mulf %18, %5 : vector<16x32xf32>
    %cst_13 = arith.constant dense<0.000000e+00> : vector<16xf32>
    %20 = vector.multi_reduction <add>, %19, %cst_13 [1] : vector<16x32xf32> to vector<16xf32>
    %21 = vector.shape_cast %20 : vector<16xf32> to vector<16x1xf32>
    %22 = arith.mulf %18, %18 : vector<16x32xf32>
    %cst_14 = arith.constant dense<0.000000e+00> : vector<16xf32>
    %23 = vector.multi_reduction <add>, %22, %cst_14 [1] : vector<16x32xf32> to vector<16xf32>
    %24 = vector.shape_cast %23 : vector<16xf32> to vector<16x1xf32>
    %25 = arith.mulf %5, %5 : vector<16x32xf32>
    %cst_15 = arith.constant dense<0.000000e+00> : vector<16xf32>
    %26 = vector.multi_reduction <add>, %25, %cst_15 [1] : vector<16x32xf32> to vector<16xf32>
    %27 = vector.shape_cast %26 : vector<16xf32> to vector<16x1xf32>
    %28 = arith.mulf %24, %27 : vector<16x1xf32>
    %cst_16 = arith.constant 1.000000e-16 : f32
    %29 = vector.broadcast %cst_16 : f32 to vector<16x1xf32>
    %30 = arith.maximumf %28, %29 : vector<16x1xf32>
    %31 = math.rsqrt %30 : vector<16x1xf32>
    %32 = arith.mulf %21, %31 : vector<16x1xf32>
    %cst_17 = arith.constant 1.000000e+00 : f32
    %33 = vector.broadcast %cst_17 : f32 to vector<16x1xf32>
    %34 = arith.subf %33, %32 : vector<16x1xf32>
    %35 = vector.extract_strided_slice %12 {offsets = [8, 0], sizes = [8, 32], strides = [1, 1]} : vector<16x32xf32> to vector<8x32xf32>
    %36 = vector.extract_strided_slice %12 {offsets = [0, 0], sizes = [8, 32], strides = [1, 1]} : vector<16x32xf32> to vector<8x32xf32>
    %37 = tpu.concatenate %35, %36 in 0 : vector<8x32xf32>, vector<8x32xf32> -> vector<16x32xf32>
    %38 = vector.extract_strided_slice %5 {offsets = [8, 0], sizes = [8, 32], strides = [1, 1]} : vector<16x32xf32> to vector<8x32xf32>
    %39 = vector.extract_strided_slice %5 {offsets = [0, 0], sizes = [8, 32], strides = [1, 1]} : vector<16x32xf32> to vector<8x32xf32>
    %40 = tpu.concatenate %38, %39 in 0 : vector<8x32xf32>, vector<8x32xf32> -> vector<16x32xf32>
    %41 = arith.addf %11, %37 : vector<16x32xf32>
    %42 = arith.mulf %41, %40 : vector<16x32xf32>
    %cst_18 = arith.constant dense<0.000000e+00> : vector<16xf32>
    %43 = vector.multi_reduction <add>, %42, %cst_18 [1] : vector<16x32xf32> to vector<16xf32>
    %44 = vector.shape_cast %43 : vector<16xf32> to vector<16x1xf32>
    %45 = arith.mulf %41, %41 : vector<16x32xf32>
    %cst_19 = arith.constant dense<0.000000e+00> : vector<16xf32>
    %46 = vector.multi_reduction <add>, %45, %cst_19 [1] : vector<16x32xf32> to vector<16xf32>
    %47 = vector.shape_cast %46 : vector<16xf32> to vector<16x1xf32>
    %48 = arith.mulf %40, %40 : vector<16x32xf32>
    %cst_20 = arith.constant dense<0.000000e+00> : vector<16xf32>
    %49 = vector.multi_reduction <add>, %48, %cst_20 [1] : vector<16x32xf32> to vector<16xf32>
    %50 = vector.shape_cast %49 : vector<16xf32> to vector<16x1xf32>
    %51 = arith.mulf %47, %50 : vector<16x1xf32>
    %cst_21 = arith.constant 1.000000e-16 : f32
    %52 = vector.broadcast %cst_21 : f32 to vector<16x1xf32>
    %53 = arith.maximumf %51, %52 : vector<16x1xf32>
    %54 = math.rsqrt %53 : vector<16x1xf32>
    %55 = arith.mulf %44, %54 : vector<16x1xf32>
    %cst_22 = arith.constant 1.000000e+00 : f32
    %56 = vector.broadcast %cst_22 : f32 to vector<16x1xf32>
    %57 = arith.subf %56, %55 : vector<16x1xf32>
    %58 = vector.extract_strided_slice %12 {offsets = [0, 0], sizes = [8, 32], strides = [1, 1]} : vector<16x32xf32> to vector<8x32xf32>
    %59 = vector.extract_strided_slice %12 {offsets = [8, 0], sizes = [8, 32], strides = [1, 1]} : vector<16x32xf32> to vector<8x32xf32>
    %60 = arith.mulf %58, %59 : vector<8x32xf32>
    %cst_23 = arith.constant dense<0.000000e+00> : vector<8xf32>
    %61 = vector.multi_reduction <add>, %60, %cst_23 [1] : vector<8x32xf32> to vector<8xf32>
    %62 = vector.shape_cast %61 : vector<8xf32> to vector<8x1xf32>
    %63 = arith.mulf %58, %58 : vector<8x32xf32>
    %cst_24 = arith.constant dense<0.000000e+00> : vector<8xf32>
    %64 = vector.multi_reduction <add>, %63, %cst_24 [1] : vector<8x32xf32> to vector<8xf32>
    %65 = vector.shape_cast %64 : vector<8xf32> to vector<8x1xf32>
    %66 = arith.mulf %59, %59 : vector<8x32xf32>
    %cst_25 = arith.constant dense<0.000000e+00> : vector<8xf32>
    %67 = vector.multi_reduction <add>, %66, %cst_25 [1] : vector<8x32xf32> to vector<8xf32>
    %68 = vector.shape_cast %67 : vector<8xf32> to vector<8x1xf32>
    %69 = arith.mulf %65, %68 : vector<8x1xf32>
    %cst_26 = arith.constant 1.000000e-16 : f32
    %70 = vector.broadcast %cst_26 : f32 to vector<8x1xf32>
    %71 = arith.maximumf %69, %70 : vector<8x1xf32>
    %72 = math.rsqrt %71 : vector<8x1xf32>
    %73 = arith.mulf %62, %72 : vector<8x1xf32>
    %cst_27 = arith.constant 0.000000e+00 : f32
    %74 = vector.broadcast %cst_27 : f32 to vector<8x1xf32>
    %75 = arith.maximumf %73, %74 : vector<8x1xf32>
    %cst_28 = arith.constant dense<0xFF800000> : vector<16xf32>
    %76 = vector.multi_reduction <maximumf>, %17, %cst_28 [1] : vector<16x4xf32> to vector<16xf32>
    %77 = vector.shape_cast %76 : vector<16xf32> to vector<16x1xf32>
    %78 = vector.broadcast %77 : vector<16x1xf32> to vector<16x4xf32>
    %79 = arith.subf %17, %78 : vector<16x4xf32>
    %80 = math.exp %79 : vector<16x4xf32>
    %cst_29 = arith.constant dense<0.000000e+00> : vector<16xf32>
    %81 = vector.multi_reduction <add>, %80, %cst_29 [1] : vector<16x4xf32> to vector<16xf32>
    %82 = vector.shape_cast %81 : vector<16xf32> to vector<16x1xf32>
    %83 = math.log %82 : vector<16x1xf32>
    %84 = arith.addf %77, %83 : vector<16x1xf32>
    %cst_30 = arith.constant dense<0.000000e+00> : vector<16xf32>
    %85 = vector.multi_reduction <add>, %17, %cst_30 [1] : vector<16x4xf32> to vector<16xf32>
    %86 = vector.shape_cast %85 : vector<16xf32> to vector<16x1xf32>
    %cst_31 = arith.constant 4.000000e+00 : f32
    %87 = vector.broadcast %cst_31 : f32 to vector<16x1xf32>
    %88 = arith.divf %86, %87 : vector<16x1xf32>
    %89 = arith.subf %84, %88 : vector<16x1xf32>
    %c0_32 = arith.constant 0 : index
    %90 = memref.load %arg9[%c0_32] : memref<4xf32, #tpu.memory_space<smem>>
    %91 = vector.shape_cast %34 : vector<16x1xf32> to vector<1x16x1xf32>
    %cst_33 = arith.constant dense<0.000000e+00> : vector<1xf32>
    %92 = vector.multi_reduction <add>, %91, %cst_33 [1, 2] : vector<1x16x1xf32> to vector<1xf32>
    %93 = vector.shape_cast %92 : vector<1xf32> to vector<1x1x1xf32>
    %94 = vector.extract %93[0, 0, 0] : f32 from vector<1x1x1xf32>
    %95 = arith.addf %90, %94 : f32
    %c0_34 = arith.constant 0 : index
    %96 = memref.load %arg9[%c0_34] : memref<4xf32, #tpu.memory_space<smem>>
    memref.store %95, %arg9[%c0_34] : memref<4xf32, #tpu.memory_space<smem>>
    %c1 = arith.constant 1 : index
    %97 = memref.load %arg9[%c1] : memref<4xf32, #tpu.memory_space<smem>>
    %98 = vector.shape_cast %57 : vector<16x1xf32> to vector<1x16x1xf32>
    %cst_35 = arith.constant dense<0.000000e+00> : vector<1xf32>
    %99 = vector.multi_reduction <add>, %98, %cst_35 [1, 2] : vector<1x16x1xf32> to vector<1xf32>
    %100 = vector.shape_cast %99 : vector<1xf32> to vector<1x1x1xf32>
    %101 = vector.extract %100[0, 0, 0] : f32 from vector<1x1x1xf32>
    %102 = arith.addf %97, %101 : f32
    %c1_36 = arith.constant 1 : index
    %103 = memref.load %arg9[%c1_36] : memref<4xf32, #tpu.memory_space<smem>>
    memref.store %102, %arg9[%c1_36] : memref<4xf32, #tpu.memory_space<smem>>
    %c2 = arith.constant 2 : index
    %104 = memref.load %arg9[%c2] : memref<4xf32, #tpu.memory_space<smem>>
    %105 = vector.shape_cast %75 : vector<8x1xf32> to vector<1x8x1xf32>
    %cst_37 = arith.constant dense<0.000000e+00> : vector<1xf32>
    %106 = vector.multi_reduction <add>, %105, %cst_37 [1, 2] : vector<1x8x1xf32> to vector<1xf32>
    %107 = vector.shape_cast %106 : vector<1xf32> to vector<1x1x1xf32>
    %108 = vector.extract %107[0, 0, 0] : f32 from vector<1x1x1xf32>
    %109 = arith.addf %104, %108 : f32
    %c2_38 = arith.constant 2 : index
    %110 = memref.load %arg9[%c2_38] : memref<4xf32, #tpu.memory_space<smem>>
    memref.store %109, %arg9[%c2_38] : memref<4xf32, #tpu.memory_space<smem>>
    %c3 = arith.constant 3 : index
    %111 = memref.load %arg9[%c3] : memref<4xf32, #tpu.memory_space<smem>>
    %112 = vector.shape_cast %89 : vector<16x1xf32> to vector<1x16x1xf32>
    %cst_39 = arith.constant dense<0.000000e+00> : vector<1xf32>
    %113 = vector.multi_reduction <add>, %112, %cst_39 [1, 2] : vector<1x16x1xf32> to vector<1xf32>
    %114 = vector.shape_cast %113 : vector<1xf32> to vector<1x1x1xf32>
    %115 = vector.extract %114[0, 0, 0] : f32 from vector<1x1x1xf32>
    %116 = arith.addf %111, %115 : f32
    %c3_40 = arith.constant 3 : index
    %117 = memref.load %arg9[%c3_40] : memref<4xf32, #tpu.memory_space<smem>>
    memref.store %116, %arg9[%c3_40] : memref<4xf32, #tpu.memory_space<smem>>
    %c1_i32 = arith.constant 1 : i32
    %118 = arith.cmpi eq, %arg0, %c1_i32 : i32
    %119 = arith.extui %118 : i1 to i32
    %c0_i32_41 = arith.constant 0 : i32
    %120 = arith.cmpi ne, %119, %c0_i32_41 : i32
    scf.if %120 {
      %c0_42 = arith.constant 0 : index
      %121 = memref.load %arg9[%c0_42] : memref<4xf32, #tpu.memory_space<smem>>
      %cst_43 = arith.constant 6.250000e-02 : f32
      %122 = arith.mulf %121, %cst_43 : f32
      %c1_44 = arith.constant 1 : index
      %123 = memref.load %arg9[%c1_44] : memref<4xf32, #tpu.memory_space<smem>>
      %cst_45 = arith.constant 6.250000e-02 : f32
      %124 = arith.mulf %123, %cst_45 : f32
      %c2_46 = arith.constant 2 : index
      %125 = memref.load %arg9[%c2_46] : memref<4xf32, #tpu.memory_space<smem>>
      %cst_47 = arith.constant 6.250000e-02 : f32
      %126 = arith.mulf %125, %cst_47 : f32
      %c3_48 = arith.constant 3 : index
      %127 = memref.load %arg9[%c3_48] : memref<4xf32, #tpu.memory_space<smem>>
      %cst_49 = arith.constant 6.250000e-02 : f32
      %128 = arith.mulf %127, %cst_49 : f32
      %c0_50 = arith.constant 0 : index
      %129 = memref.load %arg1[%c0_50] : memref<4xf32, #tpu.memory_space<smem>>
      %130 = arith.mulf %129, %122 : f32
      %c1_51 = arith.constant 1 : index
      %131 = memref.load %arg1[%c1_51] : memref<4xf32, #tpu.memory_space<smem>>
      %132 = arith.mulf %131, %124 : f32
      %133 = arith.addf %130, %132 : f32
      %c2_52 = arith.constant 2 : index
      %134 = memref.load %arg1[%c2_52] : memref<4xf32, #tpu.memory_space<smem>>
      %135 = arith.mulf %134, %126 : f32
      %136 = arith.addf %133, %135 : f32
      %c3_53 = arith.constant 3 : index
      %137 = memref.load %arg1[%c3_53] : memref<4xf32, #tpu.memory_space<smem>>
      %138 = arith.mulf %137, %128 : f32
      %139 = arith.addf %136, %138 : f32
      %c0_54 = arith.constant 0 : index
      %140 = memref.load %arg8[%c0_54] : memref<5xf32, #tpu.memory_space<smem>>
      memref.store %139, %arg8[%c0_54] : memref<5xf32, #tpu.memory_space<smem>>
      %c1_55 = arith.constant 1 : index
      %141 = memref.load %arg8[%c1_55] : memref<5xf32, #tpu.memory_space<smem>>
      memref.store %122, %arg8[%c1_55] : memref<5xf32, #tpu.memory_space<smem>>
      %c2_56 = arith.constant 2 : index
      %142 = memref.load %arg8[%c2_56] : memref<5xf32, #tpu.memory_space<smem>>
      memref.store %124, %arg8[%c2_56] : memref<5xf32, #tpu.memory_space<smem>>
      %c3_57 = arith.constant 3 : index
      %143 = memref.load %arg8[%c3_57] : memref<5xf32, #tpu.memory_space<smem>>
      memref.store %126, %arg8[%c3_57] : memref<5xf32, #tpu.memory_space<smem>>
      %c4 = arith.constant 4 : index
      %144 = memref.load %arg8[%c4] : memref<5xf32, #tpu.memory_space<smem>>
      memref.store %128, %arg8[%c4] : memref<5xf32, #tpu.memory_space<smem>>
    } else {
    }
    return
  }
  func.func @transform_0(%arg0: i32) -> i32 {
    %c0_i32 = arith.constant 0 : i32
    %c0_i32_0 = arith.constant 0 : i32
    return %c0_i32 : i32
  }
  func.func @transform_1(%arg0: i32) -> (i32, i32) {
    %c0_i32 = arith.constant 0 : i32
    %c0_i32_0 = arith.constant 0 : i32
    return %arg0, %c0_i32 : i32, i32
  }
  func.func @transform_2(%arg0: i32) -> (i32, i32) {
    %c0_i32 = arith.constant 0 : i32
    %c0_i32_0 = arith.constant 0 : i32
    return %arg0, %c0_i32 : i32, i32
  }
  func.func @transform_3(%arg0: i32) -> (i32, i32) {
    %c0_i32 = arith.constant 0 : i32
    %c0_i32_0 = arith.constant 0 : i32
    %c0_i32_1 = arith.constant 0 : i32
    return %c0_i32, %c0_i32_0 : i32, i32
  }
  func.func @transform_4(%arg0: i32) -> (i32, i32) {
    %c0_i32 = arith.constant 0 : i32
    %c0_i32_0 = arith.constant 0 : i32
    %c0_i32_1 = arith.constant 0 : i32
    return %c0_i32, %c0_i32_0 : i32, i32
  }
  func.func @transform_5(%arg0: i32) -> (i32, i32) {
    %c0_i32 = arith.constant 0 : i32
    %c0_i32_0 = arith.constant 0 : i32
    %c0_i32_1 = arith.constant 0 : i32
    return %c0_i32, %c0_i32_0 : i32, i32
  }
  func.func @transform_6(%arg0: i32) -> (i32, i32) {
    %c0_i32 = arith.constant 0 : i32
    %c0_i32_0 = arith.constant 0 : i32
    %c0_i32_1 = arith.constant 0 : i32
    return %c0_i32, %c0_i32_0 : i32, i32
  }
  func.func @transform_7(%arg0: i32) -> i32 {
    %c0_i32 = arith.constant 0 : i32
    %c0_i32_0 = arith.constant 0 : i32
    return %c0_i32 : i32
  }
}

</mosaic_0001>

<bundles_post_ra>
// kernel: tpu_custom_call.1
= control target key start
LH: loop header
LB: loop body
LE: loop exit
PB: predicated region body
PF: predicated region fallthrough
CT: control target
= control target key end

     0   :  { %s1530_s0 = inlined_call_operand.vmem [shape: f32[4], index: 0, kind: input, shape index: {}]   ;;  %s1531_s1 = inlined_call_operand.hbm [shape: f32[16,32], index: 1, kind: input, shape index: {}]   ;;  %s1532_s2 = inlined_call_operand.hbm [shape: f32[16,32], index: 2, kind: input, shape index: {}]   ;;  %s1533_s3 = inlined_call_operand.vmem [shape: f32[32,64], index: 3, kind: input, shape index: {}]   ;;  %s1534_s4 = inlined_call_operand.vmem [shape: f32[1,64], index: 4, kind: input, shape index: {}]   ;;  %s1535_s5 = inlined_call_operand.vmem [shape: f32[32,4], index: 5, kind: input, shape index: {}]   ;;  %s1536_s6 = inlined_call_operand.vmem [shape: f32[1,4], index: 6, kind: input, shape index: {}]   ;;  %s1537_s7 = inlined_call_operand.hbm [shape: f32[5], index: 7, kind: output, shape index: {}]  }
   0x1   :  { %1542 = sst [smem:[#allocation15_spill]] %s1530_s0 }
   0x2   :  { %1543 = sst [smem:[#allocation16_spill]] %s1531_s1 }
   0x3   :  { %12 = vsyncpa [#allocation6], 0 }
   0x4   :  { %13 = vsyncpa [#allocation4], 0 }
   0x5   :  { %15 = vsyncpa [#allocation4 + $0x1], 0 }
   0x6   :  { %16 = vsyncpa [#allocation9], 0 }
   0x7   :  { %18 = vsyncpa [#allocation9 + $0x1], 0 }
   0x8   :  { %19 = vsyncpa [#allocation5], 0  ;;  %s1221_s24 = smov 0   ;;  %s1223_s25 = smov 0  }
   0x9   :  { %s1225_s26 = smov 0   ;;  %s1227_s27 = smov 0  }
   0xa LB: > { %s854_s28 = sadd.s32 4294967295, %s1173_s27   ;;  %p66_p0 = scmp.ne.s32.totalorder %s1165_s25, %s1161_s24  ;;  %s1173_s27 = sphi %s1227_s27, %s1559_s27   ;;  %s1169_s26 = sphi %s1225_s26, %s1558_s26   ;;  %s1165_s25 = sphi %s1223_s25, %s1557_s25   ;;  %s1161_s24 = sphi %s1221_s24, %s1556_s24  }
   0xb   : > { %p1243_p1 = scmp.eq.s32.totalorder %s854_s28, 0  ;;  %p855_p2 = scmp.ge.s32.totalorder %s1173_s27, 1 }
   0xc   : > { %p208_p3 = scmp.lt.s32.totalorder %s1173_s27, 3  ;;  %s1546_s0 = sld [smem:[#allocation15_spill]] }
   0xd   : > { %s1544_s29 = scalar_select %p1243_p1, 1, 0 }
   0xe   : > { %p1251_p4 = por %p1243_p1, %p66_p0  ;;  %p1258_p5 = pnand %p855_p2, %p208_p3 }
   0xf   : > { %s1265_s12 = sadd.s32 1, %s1173_s27   ;;  %s53_s16 = sadd.s32 1, %s1169_s26 }
  0x10   : > { %s1545_s30 = scalar_select %p1251_p4, 1, 0 }
  0x11   : > { %s1547_s11 = scalar_select %p1258_p5, 1, 0 }
  0x12   : > { %s221_s10 = sshll.u32 %s1546_s0, 4  ;;  %p968_p6 = pneg %p1258_p5  ;;  %s222_s10 = int_to_ptr.vmem [resolvable:$true] %s221_s10 }
  0x13   : > { %s50_s14 = ssub.s32 %s1173_s27, %s1265_s12  ;;  %p60_p9 = scmp.ne.s32.totalorder %s1169_s26, %s1165_s25 }
  0x14   : > { %p1269_p7 = pnand %p968_p6, %p1243_p1  ;;  %p1275_p8 = scmp.eq.s32.totalorder %s50_s14, 0 }
  0x15   : > { %s1040_s17 = scalar_lea.vmem %s222_s10, 16  ;;  %p1048_p0 = scmp.lt.s32.totalorder %s222_s10, %s222_s10 }
  0x16   : > { %p1041_p10 = scmp.ne.s32.totalorder %s222_s10, %s1040_s17  ;;  %p1042_p11 = pneg %p1269_p7 }
  0x17   : > { %p1049_p2 = scmp.lt.s32.totalorder %s1040_s17, %s1040_s17 }
  0x18   : > { %p1043_p12 = pnand %p1042_p11, %p1041_p10 }
  0x19   : > { %p1050_p3 = por %p1049_p2, %p1048_p0 }
  0x1a   : > { %p1044_p13 = pneg %p1043_p12 }
  0x1c   : > { %p1051_p6 = pnand %p1050_p3, %p1044_p13 }
  0x1e   : > { %1054 = shalt.err (!%p1051_p6)
}
  0x1f   : > { %s1175_s18 = smov [#allocation3]   ;;  %p61_p10 = scmp.eq.s32.totalorder %s1173_s27, 0 }
  0x20   : > { %971 = dma.vmem_to_smem (!%p1269_p7), %s222_s10, 16, %s1175_s18, [#allocation6]  }
  0x21   : > { %s1289_s19 = scalar_select %p1275_p8, %s1169_s26, %s53_s16  }
  0x22   : > { %p980_p11 = scmp.lt.s32.totalorder %s1173_s27, 2  ;;  %s1294_s20 = sand.u32 1, %s1169_s26  }
  0x23   : > { %s859_s21 = sshll.u32 %s1173_s27, 7  ;;  %p62_p12 = por %p61_p10, %p60_p9 }
  0x24   : > { %s858_s22 = sshll.u32 %s1294_s20, 3  ;;  %s1550_s1 = sld [smem:[#allocation16_spill]] }
  0x25   : > { %p1308_p7 = pnand %p980_p11, %p62_p12  ;;  %s248_s10 = scalar_lea.vmem [#allocation7], %s858_s22 }
  0x26   : > { %s255_s13 = sshll.u32 %s248_s10, 4  ;;  %s245_s14 = scalar_lea.sflag [#allocation4], %s1294_s20  ;;  %s1314_s13 = int_to_ptr.vmem [resolvable:$true] %s255_s13 }
  0x27   : > { %p1057_p9 = pneg %p1308_p7 }
  0x2a   : > { %s1306_s8 = scalar_lea.hbm %s1550_s1, %s859_s21  ;;  %s1060_s18 = scalar_lea.hbm %s1550_s1, 256 }
  0x2b   : > { %s1055_s15 = scalar_lea.hbm %s1306_s8, 128  ;;  %p1061_p2 = scmp.lt.u32.totalorder %s1306_s8, %s1550_s1 }
  0x2c   : > { %p1056_p8 = scmp.ne.s32.totalorder %s1306_s8, %s1055_s15  ;;  %p1062_p3 = scmp.lt.u32.totalorder %s1060_s18, %s1055_s15 }
  0x2d   : > { %p1064_p10 = scmp.lt.u32.totalorder %s1055_s15, %s1306_s8 }
  0x2e   : > { %p1058_p13 = pnand %p1057_p9, %p1056_p8  ;;  %p1063_p6 = por %p1062_p3, %p1061_p2 }
  0x30   : > { %p1059_p0 = pneg %p1058_p13  ;;  %p1065_p11 = por %p1064_p10, %p1063_p6 }
  0x32   : > { %p1066_p12 = pnand %p1065_p11, %p1059_p0 }
  0x34   : > { %1069 = shalt.err (!%p1066_p12)
}
  0x35   : > { %s1070_s10 = scalar_lea.vmem %s1314_s13, 128  ;;  %s1176_s16 = smov [#allocation7]  }
  0x36   : > { %p1071_p8 = scmp.ne.s32.totalorder %s1314_s13, %s1070_s10  ;;  %s1075_s17 = sshll.u32 %s1176_s16, 4  ;;  %s1076_s17 = int_to_ptr.vmem [resolvable:$false] %s1075_s17 }
  0x37   : > { %s1077_s23 = scalar_lea.vmem %s1076_s17, 256  ;;  %p1078_p1 = scmp.lt.s32.totalorder %s1314_s13, %s1076_s17 }
  0x38   : > { %p1073_p13 = pnand %p1071_p8, %p1057_p9  ;;  %p1079_p2 = scmp.lt.s32.totalorder %s1077_s23, %s1070_s10 }
  0x3a   : > { %p1074_p4 = pneg %p1073_p13  ;;  %p1080_p3 = por %p1079_p2, %p1078_p1 }
  0x3c   : > { %p1081_p6 = pnand %p1080_p3, %p1074_p4 }
  0x3e   : > { %1084 = shalt.err (!%p1081_p6)
}
  0x3f   : > { %975 = dma.hbm_to_vmem [thread:$0]  (!%p1308_p7), %s1306_s8, 128, %s1314_s13, %s245_s14  }
  0x40   : > { %s1347_s24 = scalar_lea.hbm %s1532_s2, %s859_s21  ;;  %s266_s10 = scalar_lea.vmem [#allocation8], %s858_s22 }
  0x41   : > { %s273_s16 = sshll.u32 %s266_s10, 4  ;;  %s263_s17 = scalar_lea.sflag [#allocation9], %s1294_s20  ;;  %s274_s16 = int_to_ptr.vmem [resolvable:$true] %s273_s16 }
  0x42   : > { %s1085_s23 = scalar_lea.hbm %s1347_s24, 128  ;;  %s1090_s21 = scalar_lea.hbm %s1532_s2, 256 }
  0x43   : > { %p1086_p1 = scmp.ne.s32.totalorder %s1347_s24, %s1085_s23  ;;  %p1091_p10 = scmp.lt.u32.totalorder %s1347_s24, %s1532_s2 }
  0x44   : > { %p1092_p11 = scmp.lt.u32.totalorder %s1090_s21, %s1085_s23  ;;  %p1094_p8 = scmp.lt.u32.totalorder %s1085_s23, %s1347_s24 }
  0x45   : > { %p1088_p4 = pnand %p1086_p1, %p1057_p9 }
  0x46   : > { %p1093_p12 = por %p1092_p11, %p1091_p10 }
  0x47   : > { %p1089_p0 = pneg %p1088_p4 }
  0x48   : > { %p1095_p13 = por %p1094_p8, %p1093_p12 }
  0x4a   : > { %p1096_p2 = pnand %p1095_p13, %p1089_p0 }
  0x4c   : > { %1099 = shalt.err (!%p1096_p2)
}
  0x4d   : > { %s1100_s20 = scalar_lea.vmem %s274_s16, 128  ;;  %s1177_s22 = smov [#allocation8]  }
  0x4e   : > { %p1101_p3 = scmp.ne.s32.totalorder %s274_s16, %s1100_s20  ;;  %s1105_s18 = sshll.u32 %s1177_s22, 4  ;;  %s1106_s18 = int_to_ptr.vmem [resolvable:$false] %s1105_s18 }
  0x4f   : > { %s1107_s10 = scalar_lea.vmem %s1106_s18, 256  ;;  %p1108_p4 = scmp.lt.s32.totalorder %s274_s16, %s1106_s18 }
  0x50   : > { %p1103_p6 = pnand %p1101_p3, %p1057_p9  ;;  %p1109_p5 = scmp.lt.s32.totalorder %s1107_s10, %s1100_s20 }
  0x52   : > { %p1104_p1 = pneg %p1103_p6  ;;  %p1110_p10 = por %p1109_p5, %p1108_p4 }
  0x54   : > { %p1111_p11 = pnand %p1110_p10, %p1104_p1 }
  0x56   : > { %1114 = shalt.err (!%p1111_p11)
}
  0x57   : > { %978 = dma.hbm_to_vmem [thread:$0]  (!%p1308_p7), %s1347_s24, 128, %s274_s16, %s263_s17  }
  0x58   : > { %p1552_p0 = scmp.ne.s32.totalorder %s1547_s11, 0 }
  0x59   : > { %p1553_p12 = scmp.ne.s32.totalorder (!%p1552_p0), %s1544_s29, 0 }
  0x5a   : > { %282 = sbr.rel (%p1552_p0) target bundleno = 1094 (0x446), region = 48 }
  0x61   : > { %1144 = dma.done.wait (%p1553_p12), [#allocation6], 16  }
  0x62   : > { %1146 = vsyncadd (%p1553_p12), [#allocation6], 4294967280  ;;  %s288_s23 = sand.u32 1, %s1165_s25   ;;  %p1554_p5 = scmp.ne.s32.totalorder %s1545_s30, 0 }
  0x63   : > { %s864_s8 = sshll.u32 %s288_s23, 3  ;;  %s289_s13 = scalar_lea.sflag [#allocation4], %s288_s23 }
  0x64   : > { %s292_s21 = scalar_lea.vmem [#allocation7], %s864_s8 }
  0x65   : > { %1148 = dma.done.wait (%p1554_p5), %s289_s13, 128  }
  0x66   : > { %1150 = vsyncadd (%p1554_p5), %s289_s13, 4294967168  ;;  %s298_s11 = scalar_lea.sflag [#allocation9], %s288_s23  ;;  %s301_s9 = scalar_lea.vmem [#allocation8], %s864_s8 }
  0x67   : > { %1152 = dma.done.wait (%p1554_p5), %s298_s11, 128  }
  0x68   : > { %1154 = vsyncadd (%p1554_p5), %s298_s11, 4294967168 }
  0x69   : > { %306 = sfence }
  0x6a   : > { %v347_v0 = vld [vmem:[%s1533_s3] sm:$0xff]  ;;  %v348_v1 = vld [vmem:[%s1533_s3 + $0x8] sm:$0xff]  ;;  %v349_v2 = vld [vmem:[%s1533_s3 + $0x10] sm:$0xff]  ;;  %vm358_vm0 = vcmask 261120   ;;  %vm631_vm1 = vcmask 31744   ;;  %vm668_vm2 = vcmask 7168  }
  0x6b   : > { %v921_v3 = vpack.c.bf16 %v348_v1, %v347_v0  ;;  %v350_v4 = vld [vmem:[%s1533_s3 + $0x18] sm:$0xff]  ;;  %v1398_v5 = vld [vmem:[%s292_s21] sm:$0xff]  ;;  %v442_v11 = vld [vmem:[%s1535_s5 + $0x10] sm:$0xff]  ;;  %s1179_s20 = smov 0.0   ;;  %s742_s18 = sld [smem:[#allocation3]] }
  0x6c   : > { %v925_v6 = vpack.c.bf16 %v350_v4, %v349_v2  ;;  %907 = vmatprep.mubr.msk.f32.mxu0 %vm358_vm0, %v1398_v5  ;;  %v440_v7 = vld [vmem:[%s1535_s5] sm:$0xff]  ;;  %v441_v8 = vld [vmem:[%s1535_s5 + $0x8] sm:$0xff]  ;;  %v1408_v10 = vld [vmem:[%s301_s9] sm:$0xff]  ;;  %s1178_s9 = smov 96   ;;  %v556_v24 = vmul.f32 %v1398_v5, %v1398_v5  ;;  %954 = sst [smem:[#allocation2]] (%p1553_p12), %s1179_s20 }
  0x6d   : > { %922 = vmatprep.subr.bf16.mxu0 %v921_v3  ;;  %v929_v9 = vpack.c.bf16 %v441_v8, %v440_v7  ;;  %v443_v12 = vld [vmem:[%s1535_s5 + $0x18] sm:$0xff]  ;;  %v867_v14 = vld [vmem:[%s1534_s4] ss:$0 sm:$0xff]  ;;  %v557_v28 = vmul.f32 %v1408_v10, %v1408_v10  ;;  %955 = sst [smem:[#allocation2 + $0x1]] (%p1553_p12), %s1179_s20  ;;  %s667_s29 = sld [smem:[#allocation2]] }
  0x6e   : > { %924 = vmatpush3.bf16.msra.mxu0 %v921_v3  ;;  %v933_v13 = vpack.c.bf16 %v443_v12, %v442_v11  ;;  %v558_v27 = vsel %vm358_vm0, %v556_v24, 0.0  ;;  %v870_v33 = vld [vmem:[%s1536_s6] ss:$0 sm:$0xff]  ;;  %956 = sst [smem:[#allocation2 + $0x2]] (%p1553_p12), %s1179_s20  ;;  %s873_s22 = sld [smem:[#allocation2 + $0x1]] }
  0x6f   : > { %926 = vmatprep.subr.bf16.mxu0 %v925_v6  ;;  %930 = vmatprep.subr.bf16.mxu1 %v929_v9  ;;  %v561_v30 = vsel %vm358_vm0, %v557_v28, 0.0  ;;  %957 = sst [smem:[#allocation2 + $0x3]] (%p1553_p12), %s1179_s20  ;;  %s874_s30 = sld [smem:[#allocation2 + $0x2]] }
  0x70   : > { %932 = vmatpush3.bf16.msra.mxu1 %v929_v9  ;;  %p1483_p7 = scmp.eq.s32.totalorder %s854_s28, 1  ;;  %s880_s13 = sld [smem:[#allocation3 + $0x1]] }
  0x71   : > { %934 = vmatprep.subr.bf16.mxu1 %v933_v13  ;;  %s881_s21 = sld [smem:[#allocation3 + $0x2]]  ;;  %s875_s16 = sld [smem:[#allocation2 + $0x3]] }
  0x72   : > { %928 = vmatpush3.bf16.msra.mxu0 %v925_v6  ;;  %s882_s17 = sld [smem:[#allocation3 + $0x3]] }
  0x74   : > { %936 = vmatpush3.bf16.msra.mxu1 %v933_v13 }
  0x75   : > { %908 = vmatmul.mubr.msk.f32.vlgmr.msra.gmra.mrb[0].mxu0 %vm358_vm0, %v1408_v10 }
 0x148   : > { %v909_v15 = vpop.f32.mrb[0].mxu0 }
 0x149   : > { %v431_v16 = vpop.f32.mrb[1].mxu0  ;;  %v437_v18 = vadd.f32 %v909_v15, %v867_v14 }
 0x14a   : > { %v432_v17 = vadd.f32 %v867_v14, %v431_v16 }
 0x14b   : > { %v618_v19 = vmul.f32 %v437_v18, %v437_v18 }
 0x14c   : > { %532 = vrot.lane.b32.xlu1 %v432_v17, %s1178_s9  ;;  %918 = vmatprep.mubr.msk.f32.mxu1 %vm358_vm0, %v432_v17  ;;  %v602_v20 = vmul.f32 %v437_v18, %v432_v17  ;;  %v610_v40 = vmul.f32 %v432_v17, %v432_v17 }
 0x14d   : > { %919 = vmatmul.mubr.msk.f32.vlgmr.msra.gmra.mrb[0].mxu1 %vm358_vm0, %v437_v18 }
 0x150   : > { %534 = vrot.lane.b32.xlu1 %v437_v18, %s1178_s9 }
 0x154   : > { %620 = vrot.lane.b32.xlu1 %v618_v19, %s1178_s9 }
 0x158   : > { %604 = vrot.lane.b32.xlu1 %v602_v20, %s1178_s9 }
 0x1be   : > { %v533_v21 = vpop.permute.xlu1 %532 }
 0x1bf   : > { %v538_v22 = vadd.f32 %v533_v21, %v432_v17  ;;  %v575_v42 = vadd.f32 %v533_v21, %v437_v18 }
 0x1c1   : > { %v548_v23 = vmul.f32 %v538_v22, %v538_v22  ;;  %v585_v45 = vmul.f32 %v575_v42, %v575_v42  ;;  %v577_v63 = vmul.f32 %v575_v42, %v1398_v5  ;;  %v540_v0 = vmul.f32 %v538_v22, %v1398_v5 }
 0x1c2   : > { %v535_v26 = vpop.permute.xlu1 %534 }
 0x1c3   : > { %v550_v25 = vsel %vm358_vm0, %v548_v23, 0.0  ;;  %v574_v29 = vadd.f32 %v535_v26, %v432_v17  ;;  %v539_v41 = vadd.f32 %v535_v26, %v437_v18  ;;  %v589_v46 = vsel %vm358_vm0, %v585_v45, 0.0 }
 0x1c4   : > { %551 = vadd.xlane.f32.xlu1 %v550_v25  ;;  %v581_v1 = vsel %vm358_vm0, %v577_v63, 0.0  ;;  %v542_v2 = vsel %vm358_vm0, %v540_v0, 0.0 }
 0x1c5   : > { %v584_v31 = vmul.f32 %v574_v29, %v574_v29  ;;  %v549_v43 = vmul.f32 %v539_v41, %v539_v41  ;;  %v541_v59 = vmul.f32 %v539_v41, %v1408_v10  ;;  %v576_v3 = vmul.f32 %v574_v29, %v1408_v10 }
 0x1c6   : > { %v621_v47 = vpop.permute.xlu1 %620 }
 0x1c7   : > { %v586_v32 = vsel %vm358_vm0, %v584_v31, 0.0  ;;  %v553_v44 = vsel %vm358_vm0, %v549_v43, 0.0  ;;  %v623_v48 = vsel %vm358_vm0, %v621_v47, 0.0  ;;  %v545_v61 = vsel %vm358_vm0, %v541_v59, 0.0 }
 0x1c8   : > { %559 = vadd.xlane.f32.xlu1 %v558_v27  ;;  %v578_v6 = vsel %vm358_vm0, %v576_v3, 0.0 }
 0x1ca   : > { %v605_v7 = vpop.permute.xlu1 %604 }
 0x1cb   : > { %v607_v8 = vsel %vm358_vm0, %v605_v7, 0.0 }
 0x1cc   : > { %562 = vadd.xlane.f32.xlu1 %v561_v30 }
 0x1d0   : > { %587 = vadd.xlane.f32.xlu1 %v586_v32 }
 0x220   : > { %v920_v34 = vpop.f32.mrb[0].mxu1 }
 0x221   : > { %v529_v35 = vadd.f32 %v920_v34, %v870_v33  ;;  %v523_v36 = vpop.f32.mrb[1].mxu1 }
 0x222   : > { %v524_v37 = vadd.f32 %v870_v33, %v523_v36 }
 0x223   : > { %v635_v38 = vsel %vm631_vm1, %v529_v35, -inf  ;;  %v659_v5 = vsel %vm631_vm1, %v529_v35, 0.0 }
 0x224   : > { %636 = vmax.xlane.f32.xlu0 %v635_v38  ;;  %v632_v39 = vsel %vm631_vm1, %v524_v37, -inf  ;;  %v656_v4 = vsel %vm631_vm1, %v524_v37, 0.0 }
 0x228   : > { %633 = vmax.xlane.f32.xlu0 %v632_v39 }
 0x23e   : > { %612 = vrot.lane.b32.xlu0 %v610_v40, %s1178_s9 }
 0x251   : > { %v552_v9 = vpop.xlane.xlu1 %551 }
 0x255   : > { %v560_v11 = vpop.xlane.xlu1 %559 }
 0x256   : > { %v564_v15 = vmul.f32 %v560_v11, %v552_v9 }
 0x258   : > { %v566_v19 = vmax.f32 %v564_v15, 1e-16 }
 0x259   : > { %v563_v13 = vpop.xlane.xlu1 %562 }
 0x25d   : > { %554 = vadd.xlane.f32.xlu0 %v553_v44  ;;  %v588_v18 = vpop.xlane.xlu1 %587 }
 0x25e   : > { %v592_v20 = vmul.f32 %v588_v18, %v563_v13 }
 0x260   : > { %v594_v24 = vmax.f32 %v592_v20, 1e-16 }
 0x261   : > { %590 = vadd.xlane.f32.xlu0 %v589_v46 }
 0x265   : > { %624 = vadd.xlane.f32.xlu0 %v623_v48 }
 0x2b1   : > { %v1444_v49 = vpop.xlane.xlu0 %636 }
 0x2b2   : > { %v639_v50 = vsub.f32 %v529_v35, %v1444_v49 }
 0x2b4   : > { %v642_v51 = vmul.f32 1.442695, %v639_v50 }
 0x2b5   : > { %v1447_v52 = vpop.xlane.xlu0 %633 }
 0x2b6   : > { %1022 = vpow2.f32 %v642_v51  ;;  %v638_v53 = vsub.f32 %v524_v37, %v1447_v52 }
 0x2b8   : > { %v640_v54 = vmul.f32 1.442695, %v638_v53 }
 0x2b9   : > { %v613_v55 = vpop.permute.xlu0 %612 }
 0x2ba   : > { %1024 = vpow2.f32 %v640_v54  ;;  %v615_v56 = vsel %vm358_vm0, %v613_v55, 0.0 }
 0x2bb   : > { %616 = vadd.xlane.f32.xlu1 %v615_v56 }
 0x2c0   : > { %v1023_v57 = vpop.eup %1022 }
 0x2c1   : > { %v647_v58 = vsel %vm631_vm1, %v1023_v57, 0.0 }
 0x2c2   : > { %648 = vadd.xlane.f32.xlu0 %v647_v58 }
 0x2c4   : > { %v1025_v60 = vpop.eup %1024 }
 0x2c5   : > { %v644_v62 = vsel %vm631_vm1, %v1025_v60, 0.0 }
 0x2c6   : > { %546 = vadd.xlane.f32.xlu0 %v545_v61  ;;  %645 = vadd.xlane.f32.xlu1 %v644_v62 }
 0x2ca   : > { %582 = vadd.xlane.f32.xlu0 %v581_v1  ;;  %543 = vadd.xlane.f32.xlu1 %v542_v2 }
 0x2ce   : > { %657 = vadd.xlane.f32.xlu0 %v656_v4  ;;  %579 = vadd.xlane.f32.xlu1 %v578_v6 }
 0x2d2   : > { %608 = vadd.xlane.f32.xlu1 %v607_v8 }
 0x2d6   : > { %660 = vadd.xlane.f32.xlu1 %v659_v5 }
 0x2ea   : > { %v555_v12 = vpop.xlane.xlu0 %554 }
 0x2eb   : > { %v565_v10 = vmul.f32 %v563_v13, %v555_v12 }
 0x2ed   : > { %v567_v16 = vmax.f32 %v565_v10, 1e-16 }
 0x2ee   : > { %v591_v14 = vpop.xlane.xlu0 %590 }
 0x2ef   : > { %v593_v17 = vmul.f32 %v591_v14, %v560_v11  ;;  %1026 = vrsqrt.f32 %v567_v16 }
 0x2f0   : > { %1028 = vrsqrt.f32 %v566_v19 }
 0x2f1   : > { %v595_v21 = vmax.f32 %v593_v17, 1e-16 }
 0x2f2   : > { %v625_v23 = vpop.xlane.xlu0 %624 }
 0x2f3   : > { %1030 = vrsqrt.f32 %v595_v21 }
 0x2f4   : > { %1032 = vrsqrt.f32 %v594_v24 }
 0x2f9   : > { %v1027_v28 = vpop.eup %1026 }
 0x2fa   : > { %v1029_v32 = vpop.eup %1028 }
 0x2fd   : > { %v1031_v33 = vpop.eup %1030 }
 0x2fe   : > { %v1033_v40 = vpop.eup %1032 }
 0x348   : > { %v617_v22 = vpop.xlane.xlu1 %616 }
 0x349   : > { %v626_v25 = vmul.f32 %v625_v23, %v617_v22 }
 0x34b   : > { %v627_v27 = vmax.f32 %v626_v25, 1e-16 }
 0x34f   : > { %v649_v26 = vpop.xlane.xlu0 %648 }
 0x350   : > { %1034 = vlog2.f32 %v649_v26 }
 0x353   : > { %v646_v29 = vpop.xlane.xlu1 %645  ;;  %v547_v30 = vpop.xlane.xlu0 %546 }
 0x354   : > { %1036 = vlog2.f32 %v646_v29  ;;  %v571_v31 = vmul.f32 %v1027_v28, %v547_v30 }
 0x355   : > { %1038 = vrsqrt.f32 %v627_v27 }
 0x356   : > { %v573_v36 = vsub.f32 1.0, %v571_v31 }
 0x357   : > { %v544_v34 = vpop.xlane.xlu1 %543  ;;  %v583_v35 = vpop.xlane.xlu0 %582 }
 0x358   : > { %v570_v37 = vmul.f32 %v1029_v32, %v544_v34  ;;  %v599_v38 = vmul.f32 %v1031_v33, %v583_v35  ;;  %v670_v45 = vsel %vm668_vm2, %v573_v36, 0.0 }
 0x35a   : > { %v572_v39 = vsub.f32 1.0, %v570_v37  ;;  %v601_v42 = vsub.f32 1.0, %v599_v38  ;;  %v1035_v46 = vpop.eup %1034 }
 0x35b   : > { %v580_v41 = vpop.xlane.xlu1 %579  ;;  %v658_v54 = vpop.xlane.xlu0 %657  ;;  %v653_v56 = vmul.f32 0.6931472, %v1035_v46 }
 0x35c   : > { %v598_v43 = vmul.f32 %v1033_v40, %v580_v41  ;;  %v669_v44 = vsel %vm668_vm2, %v572_v39, 0.0  ;;  %v686_v59 = vsel %vm668_vm2, %v601_v42, 0.0  ;;  %v663_v62 = vmul.f32 0.25, %v658_v54 }
 0x35d   : > { %v671_v47 = vadd.f32 %v670_v45, %v669_v44  ;;  %v655_v2 = vadd.f32 %v653_v56, %v1444_v49 }
 0x35e   : > { %v1037_v48 = vpop.eup %1036  ;;  %v600_v50 = vsub.f32 1.0, %v598_v43 }
 0x35f   : > { %v1039_v51 = vpop.eup %1038  ;;  %v651_v53 = vmul.f32 0.6931472, %v1037_v48  ;;  %v609_v55 = vpop.xlane.xlu1 %608  ;;  %672 = vadd.xlane.f32.xlu0 %v671_v47 }
 0x360   : > { %v629_v57 = vmul.f32 %v1039_v51, %v609_v55  ;;  %v685_v58 = vsel %vm668_vm2, %v600_v50, 0.0 }
 0x361   : > { %v654_v60 = vadd.f32 %v651_v53, %v1447_v52  ;;  %v687_v61 = vadd.f32 %v686_v59, %v685_v58 }
 0x362   : > { %v630_v63 = vmax.f32 %v629_v57, 0.0 }
 0x363   : > { %v661_v0 = vpop.xlane.xlu1 %660  ;;  %688 = vadd.xlane.f32.xlu1 %v687_v61  ;;  %v665_v1 = vsub.f32 %v654_v60, %v663_v62 }
 0x364   : > { %v664_v3 = vmul.f32 0.25, %v661_v0  ;;  %v701_v4 = vsel %vm668_vm2, %v630_v63, 0.0 }
 0x365   : > { %702 = vadd.xlane.f32.xlu0 %v701_v4  ;;  %v715_v7 = vsel %vm668_vm2, %v665_v1, 0.0 }
 0x366   : > { %v666_v6 = vsub.f32 %v655_v2, %v664_v3 }
 0x368   : > { %v716_v52 = vsel %vm668_vm2, %v666_v6, 0.0 }
 0x369   : > { %v717_v8 = vadd.f32 %v716_v52, %v715_v7 }
 0x36b   : > { %718 = vadd.xlane.f32.xlu1 %v717_v8 }
 0x3ec   : > { %v673_v49 = vpop.xlane.xlu0 %672 }
 0x3ed   : > { %v674_v5 = vrot.slane %v673_v49, 4 }
 0x3ef   : > { %v675_v9 = vadd.f32 %v674_v5, %v673_v49 }
 0x3f0   : > { %v689_v11 = vpop.xlane.xlu1 %688 }
 0x3f1   : > { %v676_v12 = vrot.slane %v675_v9, 2  ;;  %v690_v13 = vrot.slane %v689_v11, 4 }
 0x3f2   : > { %v703_v10 = vpop.xlane.xlu0 %702 }
 0x3f3   : > { %v691_v14 = vadd.f32 %v690_v13, %v689_v11  ;;  %v704_v15 = vrot.slane %v703_v10, 4  ;;  %v677_v16 = vadd.f32 %v676_v12, %v675_v9 }
 0x3f5   : > { %v692_v17 = vrot.slane %v691_v14, 2  ;;  %v705_v18 = vadd.f32 %v704_v15, %v703_v10  ;;  %v678_v19 = vrot.slane %v677_v16, 1 }
 0x3f7   : > { %v706_v20 = vrot.slane %v705_v18, 2  ;;  %v679_v21 = vadd.f32 %v678_v19, %v677_v16  ;;  %v693_v22 = vadd.f32 %v692_v17, %v691_v14 }
 0x3f8   : > { %v719_v23 = vpop.xlane.xlu1 %718 }
 0x3f9   : > { %v707_v24 = vadd.f32 %v706_v20, %v705_v18  ;;  %v720_v25 = vrot.slane %v719_v23, 4  ;;  %937 = vpush %v679_v21  ;;  %v694_v26 = vrot.slane %v693_v22, 1 }
 0x3fb   : > { %v721_v27 = vadd.f32 %v720_v25, %v719_v23  ;;  %v695_v28 = vadd.f32 %v694_v26, %v693_v22  ;;  %v708_v29 = vrot.slane %v707_v24, 1 }
 0x3fd   : > { %v722_v30 = vrot.slane %v721_v27, 2  ;;  %939 = vpush %v695_v28  ;;  %v709_v31 = vadd.f32 %v708_v29, %v707_v24 }
 0x3ff   : > { %v723_v32 = vadd.f32 %v722_v30, %v721_v27  ;;  %941 = vpush %v709_v31 }
 0x401   : > { %v724_v33 = vrot.slane %v723_v32, 1 }
 0x403   : > { %v725_v34 = vadd.f32 %v724_v33, %v723_v32 }
 0x405   : > { %943 = vpush %v725_v34 }
 0x42a   : > { %s938_s10 = spop %937 }
 0x42b   : > { %s681_s23 = sadd.f32 %s938_s10, %s667_s29 }
 0x42d   : > { %683 = sst [smem:[#allocation2]] %s681_s23  ;;  %s735_s11 = smul.f32 0.0625, %s681_s23 }
 0x42e   : > { %s940_s24 = spop %939 }
 0x42f   : > { %960 = sst [smem:[#allocation10 + $0x1]] (%p1483_p7), %s735_s11  ;;  %s743_s15 = smul.f32 %s742_s18, %s735_s11 }
 0x430   : > { %s697_s9 = sadd.f32 %s940_s24, %s873_s22  ;;  %s942_s14 = spop %941 }
 0x431   : > { %s711_s27 = sadd.f32 %s942_s14, %s874_s30 }
 0x432   : > { %699 = sst [smem:[#allocation2 + $0x1]] %s697_s9  ;;  %s737_s28 = smul.f32 0.0625, %s697_s9 }
 0x433   : > { %713 = sst [smem:[#allocation2 + $0x2]] %s711_s27  ;;  %s739_s20 = smul.f32 0.0625, %s711_s27 }
 0x434   : > { %s745_s29 = smul.f32 %s880_s13, %s737_s28  ;;  %961 = sst [smem:[#allocation10 + $0x2]] (%p1483_p7), %s737_s28 }
 0x435   : > { %s748_s10 = smul.f32 %s881_s21, %s739_s20  ;;  %962 = sst [smem:[#allocation10 + $0x3]] (%p1483_p7), %s739_s20 }
 0x436   : > { %s746_s23 = sadd.f32 %s745_s29, %s743_s15  ;;  %s944_s0 = spop %943 }
 0x437   : > { %s727_s1 = sadd.f32 %s944_s0, %s875_s16  ;;  %s1115_s9 = scalar_lea.hbm %s1537_s7, 16 }
 0x438   : > { %s749_s18 = sadd.f32 %s748_s10, %s746_s23  ;;  %p1116_p9 = scmp.ne.s32.totalorder %s1537_s7, %s1115_s9 }
 0x439   : > { %729 = sst [smem:[#allocation2 + $0x3]] %s727_s1  ;;  %s741_s22 = smul.f32 0.0625, %s727_s1 }
 0x43a   : > { %p1117_p8 = pnand %p1116_p9, %p1483_p7  ;;  %p1121_p2 = scmp.lt.u32.totalorder %s1115_s9, %s1537_s7 }
 0x43b   : > { %s751_s30 = smul.f32 %s882_s17, %s741_s22  ;;  %963 = sst [smem:[#allocation10 + $0x4]] (%p1483_p7), %s741_s22 }
 0x43c   : > { %p1118_p13 = pneg %p1117_p8 }
 0x43d   : > { %s752_s11 = sadd.f32 %s751_s30, %s749_s18 }
 0x43e   : > { %p1123_p3 = pnand %p1121_p2, %p1118_p13 }
 0x43f   : > { %959 = sst [smem:[#allocation10]] (%p1483_p7), %s752_s11 }
 0x440   : > { %1126 = shalt.err (!%p1123_p3)
}
 0x441   : > { %s1180_s16 = smov [#allocation10]  }
 0x442   : > { %965 = dma.smem_to_hbm (%p1483_p7), %s1180_s16, 16, %s1537_s7, [#allocation5]  }
 0x443   : > { %1156 = dma.done.wait (%p1483_p7), [#allocation5], 16  }
 0x444   : > { %1158 = vsyncadd (%p1483_p7), [#allocation5], 4294967280 }
 0x445   : > { %776 = sfence }
 0x446 PF: > { %p22_p6 = scmp.ge.s32.totalorder %s1265_s12, 4   ;;  %s1556_s24 = smov %s1165_s25 }
 0x447   : > { %s1557_s25 = smov %s1169_s26  ;;  %s1558_s26 = smov %s1289_s19 }
 0x448   : > { %s1559_s27 = smov %s1265_s12  ;;  %24 = sbr.rel (!%p22_p6) target bundleno = 10 (0xa), region = 124 }
 0x44f   :  { %782 = vsyncpa [#allocation4], 1 }
 0x450   :  { %784 = vsyncpa [#allocation4 + $0x1], 1 }
 0x451   :  { %785 = vsyncpa [#allocation9], 1 }
 0x452   :  { %787 = vsyncpa [#allocation9 + $0x1], 1 }
 0x453   :  { %788 = vsyncpa [#allocation5], 1 }
 0x454   :  { %790 = vsyncpa [#allocation5 + $0x1], 1 }
 0x455   :  { %791 = vsyncpa [#allocation6], 1 }
 0x456   :  { %793 = vsyncpa [#allocation6 + $0x1], 1 }

</bundles_post_ra>
